<compile_context>
chip_gen: v7x
topology: tpu7x:2x2x1
jax: 0.10.0
libtpu: 0.0.40
codegen_flags: <defaults>
</compile_context>

<pallas_src>
import functools

import jax
import jax.numpy as jnp
from jax.experimental import pallas as pl
from jax.experimental.pallas import tpu as pltpu

LANES = 128
NEG_PAD = -1e30  # padded softmax-logit bias lanes -> exp() underflows to 0


def _round_up(x, m):
    return (x + m - 1) // m * m


def _make_layout(state_dim, action_dim, latent_ec_dim, latent_dim):
    """Row offsets of each weight/bias segment inside the packed slab."""
    offs = {}
    r = 0

    def seg(name, nrows):
        nonlocal r
        offs[name] = r
        r += _round_up(nrows, 8)

    seg("e1w", state_dim + action_dim)
    seg("e1b", 1)
    seg("e2w", latent_ec_dim)
    seg("e2b", 1)
    seg("d1w", state_dim + latent_dim)
    seg("d1b", 1)
    seg("d2w", latent_ec_dim)
    seg("d2b", 1)
    seg("d3w", latent_ec_dim)
    seg("d3b", 1)
    offs["rows"] = _round_up(r, 8)
    return offs


# ----------------------------- Pallas kernel ------------------------------ #
def _vae_forward_kernel(state_ref, action_ref, slab_ref, out_ref, *,
                        state_dim, action_dim, latent_ec_dim, latent_dim,
                        layout):
    s = state_ref[...]      # (TB, state_dim)
    a = action_ref[...]     # (TB, action_dim)

    def dense(cols, w_row0, b_row):
        # y = sum_k cols[k] * W[k, :] + b  — unrolled VPU broadcast-FMA chain.
        acc = slab_ref[b_row:b_row + 1, :]                              # (1, 128)
        for k, c in enumerate(cols):
            acc = acc + c * slab_ref[w_row0 + k:w_row0 + k + 1, :]      # (TB,1)*(1,128)
        return acc

    def cols_of(x, n):
        return [x[:, k:k + 1] for k in range(n)]

    s_cols = cols_of(s, state_dim)
    a_cols = cols_of(a, action_dim)

    # e1: relu(Linear(cat([state, action])))  — concat folded into FMA loop.
    h = jnp.maximum(dense(s_cols + a_cols, layout["e1w"], layout["e1b"]), 0.0)
    # e2
    z = jnp.maximum(dense(cols_of(h, latent_ec_dim), layout["e2w"], layout["e2b"]), 0.0)
    # d1: relu(Linear(cat([state, z])))
    d = jnp.maximum(dense(s_cols + cols_of(z, latent_dim), layout["d1w"], layout["d1b"]), 0.0)
    # d2
    d = jnp.maximum(dense(cols_of(d, latent_ec_dim), layout["d2w"], layout["d2b"]), 0.0)
    # d3 + softmax over the full 128-lane row (padded bias lanes = -1e30 -> exp == 0).
    logits = dense(cols_of(d, latent_ec_dim), layout["d3w"], layout["d3b"])
    m = jnp.max(logits, axis=-1, keepdims=True)
    e = jnp.exp(logits - m)
    denom = jnp.sum(e, axis=-1, keepdims=True)
    # Exact divide (not approx reciprocal) so probabilities sum to 1 to float
    # precision; the divide cost is negligible at these shapes.
    out_ref[...] = e / denom


# ------------------------------ JAX wrapper -------------------------------- #
def make_vae_forward(*, state_dim=3, action_dim=1, latent_ec_dim=10,
                     latent_dim=10, num_A=5, max_batch_block=128):
    assert max(latent_ec_dim, latent_dim, num_A,
               state_dim + action_dim, state_dim + latent_dim) <= LANES
    layout = _make_layout(state_dim, action_dim, latent_ec_dim, latent_dim)
    kernel = functools.partial(
        _vae_forward_kernel,
        state_dim=state_dim, action_dim=action_dim,
        latent_ec_dim=latent_ec_dim, latent_dim=latent_dim, layout=layout)

    @jax.jit
    def forward(state, action, slab):
        B = state.shape[0]
        tb = min(_round_up(B, 8), max_batch_block)      # batch block (multiple of 8)
        b_pad = _round_up(B, tb)
        if b_pad != B:
            state = jnp.pad(state, ((0, b_pad - B), (0, 0)))
            action = jnp.pad(action, ((0, b_pad - B), (0, 0)))
        out = pl.pallas_call(
            kernel,
            out_shape=jax.ShapeDtypeStruct((b_pad, LANES), jnp.float32),
            grid=(b_pad // tb,),
            in_specs=[
                pl.BlockSpec((tb, state_dim), lambda i: (i, 0)),
                pl.BlockSpec((tb, action_dim), lambda i: (i, 0)),
                # Constant block index -> weight slab stays VMEM-resident.
                pl.BlockSpec((layout["rows"], LANES), lambda i: (0, 0)),
            ],
            out_specs=pl.BlockSpec((tb, LANES), lambda i: (i, 0)),
            compiler_params=pltpu.CompilerParams(
                dimension_semantics=("parallel",)),
        )(state.astype(jnp.float32), action.astype(jnp.float32), slab)
        return out[:B, :num_A]

    return forward


# ------------------- one-time parameter packing (init time) ---------------- #
def pack_params(params, *, state_dim, action_dim, latent_ec_dim, latent_dim, num_A):
    """Pack all weights/biases into one lane-padded (rows, 128) f32 slab."""
    del num_A  # implied by bd3's width
    layout = _make_layout(state_dim, action_dim, latent_ec_dim, latent_dim)
    slab = jnp.zeros((layout["rows"], LANES), jnp.float32)

    def put_w(s, row, w):
        w = jnp.asarray(w, jnp.float32)
        return s.at[row:row + w.shape[0], :w.shape[1]].set(w)

    def put_b(s, row, b, pad_value=0.0):
        b = jnp.asarray(b, jnp.float32).reshape(-1)
        line = jnp.full((LANES,), pad_value, jnp.float32).at[:b.shape[0]].set(b)
        return s.at[row, :].set(line)

    slab = put_w(slab, layout["e1w"], params["we1"])
    slab = put_b(slab, layout["e1b"], params["be1"])
    slab = put_w(slab, layout["e2w"], params["we2"])
    slab = put_b(slab, layout["e2b"], params["be2"])
    slab = put_w(slab, layout["d1w"], params["wd1"])
    slab = put_b(slab, layout["d1b"], params["bd1"])
    slab = put_w(slab, layout["d2w"], params["wd2"])
    slab = put_b(slab, layout["d2b"], params["bd2"])
    slab = put_w(slab, layout["d3w"], params["wd3"])
    slab = put_b(slab, layout["d3b"], params["bd3"], pad_value=NEG_PAD)
    return slab


# ---------------------- deterministic parameter init ----------------------- #
def init_params(key, state_dim=3, action_dim=1, latent_ec_dim=10, latent_dim=10, num_A=5):
    """Deterministic (PRNGKey-based) init; weights stored as (in, out)."""
    ks = jax.random.split(key, 10)

    def lin(kw, kb, fan_in, fan_out):
        bound = 1.0 / jnp.sqrt(fan_in)
        w = jax.random.uniform(kw, (fan_in, fan_out), jnp.float32, -bound, bound)
        b = jax.random.uniform(kb, (1, fan_out), jnp.float32, -bound, bound)
        return w, b

    we1, be1 = lin(ks[0], ks[1], state_dim + action_dim, latent_ec_dim)
    we2, be2 = lin(ks[2], ks[3], latent_ec_dim, latent_dim)
    wd1, bd1 = lin(ks[4], ks[5], state_dim + latent_dim, latent_ec_dim)
    wd2, bd2 = lin(ks[6], ks[7], latent_ec_dim, latent_ec_dim)
    wd3, bd3 = lin(ks[8], ks[9], latent_ec_dim, num_A)
    return dict(we1=we1, be1=be1, we2=we2, be2=be2,
                wd1=wd1, bd1=bd1, wd2=wd2, bd2=bd2, wd3=wd3, bd3=bd3)


# ------------------------------- reference --------------------------------- #
def vae_forward_ref(state, action, params):
    h = jnp.maximum(jnp.concatenate([state, action], 1) @ params["we1"] + params["be1"], 0.0)
    z = jnp.maximum(h @ params["we2"] + params["be2"], 0.0)
    d = jnp.maximum(jnp.concatenate([state, z], 1) @ params["wd1"] + params["bd1"], 0.0)
    d = jnp.maximum(d @ params["wd2"] + params["bd2"], 0.0)
    logits = d @ params["wd3"] + params["bd3"]
    return jax.nn.softmax(logits, axis=-1)


if __name__ == "__main__":
    key = jax.random.PRNGKey(0)
    k_state, k_action, k_params = jax.random.split(key, 3)

    B, state_dim, action_dim = 8, 3, 1
    latent_ec_dim = latent_dim = 10
    num_A = 5

    state = jax.random.normal(k_state, (B, state_dim), jnp.float32)
    action = jax.random.normal(k_action, (B, action_dim), jnp.float32)

    params = init_params(k_params, state_dim=state_dim, action_dim=action_dim,
                         latent_ec_dim=latent_ec_dim, latent_dim=latent_dim, num_A=num_A)
    slab = pack_params(params, state_dim=state_dim, action_dim=action_dim,
                       latent_ec_dim=latent_ec_dim, latent_dim=latent_dim, num_A=num_A)

    fwd = make_vae_forward(state_dim=state_dim, action_dim=action_dim,
                           latent_ec_dim=latent_ec_dim, latent_dim=latent_dim,
                           num_A=num_A)

    out = jax.block_until_ready(fwd(state, action, slab))
    ref = jax.block_until_ready(vae_forward_ref(state, action, params))

    assert out.shape == (B, num_A) and out.dtype == jnp.float32
    assert jnp.allclose(out, ref, atol=1e-4, rtol=1e-4), (out, ref)
    # Exact divide in the kernel -> probabilities sum to 1 to float precision.
    assert jnp.allclose(jnp.sum(out, axis=-1), 1.0, atol=1e-4)
    print("KERNEL_OK")
</pallas_src>

<mosaic_0001>
module attributes {stable_mosaic.version = 11 : i64} {
  func.func @_vae_forward_kernel(%arg0: i32, %arg1: memref<8x3xf32, #tpu.memory_space<vmem>>, %arg2: memref<8x1xf32, #tpu.memory_space<vmem>>, %arg3: memref<112x128xf32, #tpu.memory_space<vmem>>, %arg4: memref<8x128xf32, #tpu.memory_space<vmem>>) attributes {dimension_semantics = [#tpu.dimension_semantics<parallel>], iteration_bounds = array<i64: 1>, scalar_prefetch = 0 : i64, scratch_operands = 0 : i64, tpu.core_type = #tpu.core_type<tc>, window_params = [{transform_indices = @transform_0, window_bounds = array<i64: 8, 3>}, {transform_indices = @transform_1, window_bounds = array<i64: 8, 1>}, {pipeline_mode = #tpu.pipeline_mode<synchronous>, transform_indices = @transform_2, window_bounds = array<i64: 112, 128>}, {transform_indices = @transform_3, window_bounds = array<i64: 8, 128>}]} {
    %c0 = arith.constant 0 : index
    %c0_0 = arith.constant 0 : index
    %0 = vector.load %arg1[%c0, %c0_0] : memref<8x3xf32, #tpu.memory_space<vmem>>, vector<8x3xf32>
    %c0_1 = arith.constant 0 : index
    %c0_2 = arith.constant 0 : index
    %1 = vector.load %arg2[%c0_1, %c0_2] : memref<8x1xf32, #tpu.memory_space<vmem>>, vector<8x1xf32>
    %2 = vector.extract_strided_slice %0 {offsets = [0, 0], sizes = [8, 1], strides = [1, 1]} : vector<8x3xf32> to vector<8x1xf32>
    %3 = vector.extract_strided_slice %0 {offsets = [0, 1], sizes = [8, 1], strides = [1, 1]} : vector<8x3xf32> to vector<8x1xf32>
    %4 = vector.extract_strided_slice %0 {offsets = [0, 2], sizes = [8, 1], strides = [1, 1]} : vector<8x3xf32> to vector<8x1xf32>
    %c8 = arith.constant 8 : index
    %c0_3 = arith.constant 0 : index
    %5 = vector.load %arg3[%c8, %c0_3] : memref<112x128xf32, #tpu.memory_space<vmem>>, vector<1x128xf32>
    %c0_4 = arith.constant 0 : index
    %c0_5 = arith.constant 0 : index
    %6 = vector.load %arg3[%c0_4, %c0_5] : memref<112x128xf32, #tpu.memory_space<vmem>>, vector<1x128xf32>
    %7 = vector.broadcast %2 : vector<8x1xf32> to vector<8x128xf32>
    %8 = vector.broadcast %6 : vector<1x128xf32> to vector<8x128xf32>
    %9 = arith.mulf %7, %8 : vector<8x128xf32>
    %10 = vector.broadcast %5 : vector<1x128xf32> to vector<8x128xf32>
    %11 = arith.addf %10, %9 : vector<8x128xf32>
    %c1 = arith.constant 1 : index
    %c0_6 = arith.constant 0 : index
    %12 = vector.load %arg3[%c1, %c0_6] : memref<112x128xf32, #tpu.memory_space<vmem>>, vector<1x128xf32>
    %13 = vector.broadcast %3 : vector<8x1xf32> to vector<8x128xf32>
    %14 = vector.broadcast %12 : vector<1x128xf32> to vector<8x128xf32>
    %15 = arith.mulf %13, %14 : vector<8x128xf32>
    %16 = arith.addf %11, %15 : vector<8x128xf32>
    %c2 = arith.constant 2 : index
    %c0_7 = arith.constant 0 : index
    %17 = vector.load %arg3[%c2, %c0_7] : memref<112x128xf32, #tpu.memory_space<vmem>>, vector<1x128xf32>
    %18 = vector.broadcast %4 : vector<8x1xf32> to vector<8x128xf32>
    %19 = vector.broadcast %17 : vector<1x128xf32> to vector<8x128xf32>
    %20 = arith.mulf %18, %19 : vector<8x128xf32>
    %21 = arith.addf %16, %20 : vector<8x128xf32>
    %c3 = arith.constant 3 : index
    %c0_8 = arith.constant 0 : index
    %22 = vector.load %arg3[%c3, %c0_8] : memref<112x128xf32, #tpu.memory_space<vmem>>, vector<1x128xf32>
    %23 = vector.broadcast %1 : vector<8x1xf32> to vector<8x128xf32>
    %24 = vector.broadcast %22 : vector<1x128xf32> to vector<8x128xf32>
    %25 = arith.mulf %23, %24 : vector<8x128xf32>
    %26 = arith.addf %21, %25 : vector<8x128xf32>
    %cst = arith.constant 0.000000e+00 : f32
    %27 = vector.broadcast %cst : f32 to vector<8x128xf32>
    %28 = arith.maximumf %26, %27 : vector<8x128xf32>
    %29 = vector.extract_strided_slice %28 {offsets = [0, 0], sizes = [8, 1], strides = [1, 1]} : vector<8x128xf32> to vector<8x1xf32>
    %30 = vector.extract_strided_slice %28 {offsets = [0, 1], sizes = [8, 1], strides = [1, 1]} : vector<8x128xf32> to vector<8x1xf32>
    %31 = vector.extract_strided_slice %28 {offsets = [0, 2], sizes = [8, 1], strides = [1, 1]} : vector<8x128xf32> to vector<8x1xf32>
    %32 = vector.extract_strided_slice %28 {offsets = [0, 3], sizes = [8, 1], strides = [1, 1]} : vector<8x128xf32> to vector<8x1xf32>
    %33 = vector.extract_strided_slice %28 {offsets = [0, 4], sizes = [8, 1], strides = [1, 1]} : vector<8x128xf32> to vector<8x1xf32>
    %34 = vector.extract_strided_slice %28 {offsets = [0, 5], sizes = [8, 1], strides = [1, 1]} : vector<8x128xf32> to vector<8x1xf32>
    %35 = vector.extract_strided_slice %28 {offsets = [0, 6], sizes = [8, 1], strides = [1, 1]} : vector<8x128xf32> to vector<8x1xf32>
    %36 = vector.extract_strided_slice %28 {offsets = [0, 7], sizes = [8, 1], strides = [1, 1]} : vector<8x128xf32> to vector<8x1xf32>
    %37 = vector.extract_strided_slice %28 {offsets = [0, 8], sizes = [8, 1], strides = [1, 1]} : vector<8x128xf32> to vector<8x1xf32>
    %38 = vector.extract_strided_slice %28 {offsets = [0, 9], sizes = [8, 1], strides = [1, 1]} : vector<8x128xf32> to vector<8x1xf32>
    %c32 = arith.constant 32 : index
    %c0_9 = arith.constant 0 : index
    %39 = vector.load %arg3[%c32, %c0_9] : memref<112x128xf32, #tpu.memory_space<vmem>>, vector<1x128xf32>
    %c16 = arith.constant 16 : index
    %c0_10 = arith.constant 0 : index
    %40 = vector.load %arg3[%c16, %c0_10] : memref<112x128xf32, #tpu.memory_space<vmem>>, vector<1x128xf32>
    %41 = vector.broadcast %29 : vector<8x1xf32> to vector<8x128xf32>
    %42 = vector.broadcast %40 : vector<1x128xf32> to vector<8x128xf32>
    %43 = arith.mulf %41, %42 : vector<8x128xf32>
    %44 = vector.broadcast %39 : vector<1x128xf32> to vector<8x128xf32>
    %45 = arith.addf %44, %43 : vector<8x128xf32>
    %c17 = arith.constant 17 : index
    %c0_11 = arith.constant 0 : index
    %46 = vector.load %arg3[%c17, %c0_11] : memref<112x128xf32, #tpu.memory_space<vmem>>, vector<1x128xf32>
    %47 = vector.broadcast %30 : vector<8x1xf32> to vector<8x128xf32>
    %48 = vector.broadcast %46 : vector<1x128xf32> to vector<8x128xf32>
    %49 = arith.mulf %47, %48 : vector<8x128xf32>
    %50 = arith.addf %45, %49 : vector<8x128xf32>
    %c18 = arith.constant 18 : index
    %c0_12 = arith.constant 0 : index
    %51 = vector.load %arg3[%c18, %c0_12] : memref<112x128xf32, #tpu.memory_space<vmem>>, vector<1x128xf32>
    %52 = vector.broadcast %31 : vector<8x1xf32> to vector<8x128xf32>
    %53 = vector.broadcast %51 : vector<1x128xf32> to vector<8x128xf32>
    %54 = arith.mulf %52, %53 : vector<8x128xf32>
    %55 = arith.addf %50, %54 : vector<8x128xf32>
    %c19 = arith.constant 19 : index
    %c0_13 = arith.constant 0 : index
    %56 = vector.load %arg3[%c19, %c0_13] : memref<112x128xf32, #tpu.memory_space<vmem>>, vector<1x128xf32>
    %57 = vector.broadcast %32 : vector<8x1xf32> to vector<8x128xf32>
    %58 = vector.broadcast %56 : vector<1x128xf32> to vector<8x128xf32>
    %59 = arith.mulf %57, %58 : vector<8x128xf32>
    %60 = arith.addf %55, %59 : vector<8x128xf32>
    %c20 = arith.constant 20 : index
    %c0_14 = arith.constant 0 : index
    %61 = vector.load %arg3[%c20, %c0_14] : memref<112x128xf32, #tpu.memory_space<vmem>>, vector<1x128xf32>
    %62 = vector.broadcast %33 : vector<8x1xf32> to vector<8x128xf32>
    %63 = vector.broadcast %61 : vector<1x128xf32> to vector<8x128xf32>
    %64 = arith.mulf %62, %63 : vector<8x128xf32>
    %65 = arith.addf %60, %64 : vector<8x128xf32>
    %c21 = arith.constant 21 : index
    %c0_15 = arith.constant 0 : index
    %66 = vector.load %arg3[%c21, %c0_15] : memref<112x128xf32, #tpu.memory_space<vmem>>, vector<1x128xf32>
    %67 = vector.broadcast %34 : vector<8x1xf32> to vector<8x128xf32>
    %68 = vector.broadcast %66 : vector<1x128xf32> to vector<8x128xf32>
    %69 = arith.mulf %67, %68 : vector<8x128xf32>
    %70 = arith.addf %65, %69 : vector<8x128xf32>
    %c22 = arith.constant 22 : index
    %c0_16 = arith.constant 0 : index
    %71 = vector.load %arg3[%c22, %c0_16] : memref<112x128xf32, #tpu.memory_space<vmem>>, vector<1x128xf32>
    %72 = vector.broadcast %35 : vector<8x1xf32> to vector<8x128xf32>
    %73 = vector.broadcast %71 : vector<1x128xf32> to vector<8x128xf32>
    %74 = arith.mulf %72, %73 : vector<8x128xf32>
    %75 = arith.addf %70, %74 : vector<8x128xf32>
    %c23 = arith.constant 23 : index
    %c0_17 = arith.constant 0 : index
    %76 = vector.load %arg3[%c23, %c0_17] : memref<112x128xf32, #tpu.memory_space<vmem>>, vector<1x128xf32>
    %77 = vector.broadcast %36 : vector<8x1xf32> to vector<8x128xf32>
    %78 = vector.broadcast %76 : vector<1x128xf32> to vector<8x128xf32>
    %79 = arith.mulf %77, %78 : vector<8x128xf32>
    %80 = arith.addf %75, %79 : vector<8x128xf32>
    %c24 = arith.constant 24 : index
    %c0_18 = arith.constant 0 : index
    %81 = vector.load %arg3[%c24, %c0_18] : memref<112x128xf32, #tpu.memory_space<vmem>>, vector<1x128xf32>
    %82 = vector.broadcast %37 : vector<8x1xf32> to vector<8x128xf32>
    %83 = vector.broadcast %81 : vector<1x128xf32> to vector<8x128xf32>
    %84 = arith.mulf %82, %83 : vector<8x128xf32>
    %85 = arith.addf %80, %84 : vector<8x128xf32>
    %c25 = arith.constant 25 : index
    %c0_19 = arith.constant 0 : index
    %86 = vector.load %arg3[%c25, %c0_19] : memref<112x128xf32, #tpu.memory_space<vmem>>, vector<1x128xf32>
    %87 = vector.broadcast %38 : vector<8x1xf32> to vector<8x128xf32>
    %88 = vector.broadcast %86 : vector<1x128xf32> to vector<8x128xf32>
    %89 = arith.mulf %87, %88 : vector<8x128xf32>
    %90 = arith.addf %85, %89 : vector<8x128xf32>
    %cst_20 = arith.constant 0.000000e+00 : f32
    %91 = vector.broadcast %cst_20 : f32 to vector<8x128xf32>
    %92 = arith.maximumf %90, %91 : vector<8x128xf32>
    %93 = vector.extract_strided_slice %92 {offsets = [0, 0], sizes = [8, 1], strides = [1, 1]} : vector<8x128xf32> to vector<8x1xf32>
    %94 = vector.extract_strided_slice %92 {offsets = [0, 1], sizes = [8, 1], strides = [1, 1]} : vector<8x128xf32> to vector<8x1xf32>
    %95 = vector.extract_strided_slice %92 {offsets = [0, 2], sizes = [8, 1], strides = [1, 1]} : vector<8x128xf32> to vector<8x1xf32>
    %96 = vector.extract_strided_slice %92 {offsets = [0, 3], sizes = [8, 1], strides = [1, 1]} : vector<8x128xf32> to vector<8x1xf32>
    %97 = vector.extract_strided_slice %92 {offsets = [0, 4], sizes = [8, 1], strides = [1, 1]} : vector<8x128xf32> to vector<8x1xf32>
    %98 = vector.extract_strided_slice %92 {offsets = [0, 5], sizes = [8, 1], strides = [1, 1]} : vector<8x128xf32> to vector<8x1xf32>
    %99 = vector.extract_strided_slice %92 {offsets = [0, 6], sizes = [8, 1], strides = [1, 1]} : vector<8x128xf32> to vector<8x1xf32>
    %100 = vector.extract_strided_slice %92 {offsets = [0, 7], sizes = [8, 1], strides = [1, 1]} : vector<8x128xf32> to vector<8x1xf32>
    %101 = vector.extract_strided_slice %92 {offsets = [0, 8], sizes = [8, 1], strides = [1, 1]} : vector<8x128xf32> to vector<8x1xf32>
    %102 = vector.extract_strided_slice %92 {offsets = [0, 9], sizes = [8, 1], strides = [1, 1]} : vector<8x128xf32> to vector<8x1xf32>
    %c56 = arith.constant 56 : index
    %c0_21 = arith.constant 0 : index
    %103 = vector.load %arg3[%c56, %c0_21] : memref<112x128xf32, #tpu.memory_space<vmem>>, vector<1x128xf32>
    %c40 = arith.constant 40 : index
    %c0_22 = arith.constant 0 : index
    %104 = vector.load %arg3[%c40, %c0_22] : memref<112x128xf32, #tpu.memory_space<vmem>>, vector<1x128xf32>
    %105 = vector.broadcast %2 : vector<8x1xf32> to vector<8x128xf32>
    %106 = vector.broadcast %104 : vector<1x128xf32> to vector<8x128xf32>
    %107 = arith.mulf %105, %106 : vector<8x128xf32>
    %108 = vector.broadcast %103 : vector<1x128xf32> to vector<8x128xf32>
    %109 = arith.addf %108, %107 : vector<8x128xf32>
    %c41 = arith.constant 41 : index
    %c0_23 = arith.constant 0 : index
    %110 = vector.load %arg3[%c41, %c0_23] : memref<112x128xf32, #tpu.memory_space<vmem>>, vector<1x128xf32>
    %111 = vector.broadcast %3 : vector<8x1xf32> to vector<8x128xf32>
    %112 = vector.broadcast %110 : vector<1x128xf32> to vector<8x128xf32>
    %113 = arith.mulf %111, %112 : vector<8x128xf32>
    %114 = arith.addf %109, %113 : vector<8x128xf32>
    %c42 = arith.constant 42 : index
    %c0_24 = arith.constant 0 : index
    %115 = vector.load %arg3[%c42, %c0_24] : memref<112x128xf32, #tpu.memory_space<vmem>>, vector<1x128xf32>
    %116 = vector.broadcast %4 : vector<8x1xf32> to vector<8x128xf32>
    %117 = vector.broadcast %115 : vector<1x128xf32> to vector<8x128xf32>
    %118 = arith.mulf %116, %117 : vector<8x128xf32>
    %119 = arith.addf %114, %118 : vector<8x128xf32>
    %c43 = arith.constant 43 : index
    %c0_25 = arith.constant 0 : index
    %120 = vector.load %arg3[%c43, %c0_25] : memref<112x128xf32, #tpu.memory_space<vmem>>, vector<1x128xf32>
    %121 = vector.broadcast %93 : vector<8x1xf32> to vector<8x128xf32>
    %122 = vector.broadcast %120 : vector<1x128xf32> to vector<8x128xf32>
    %123 = arith.mulf %121, %122 : vector<8x128xf32>
    %124 = arith.addf %119, %123 : vector<8x128xf32>
    %c44 = arith.constant 44 : index
    %c0_26 = arith.constant 0 : index
    %125 = vector.load %arg3[%c44, %c0_26] : memref<112x128xf32, #tpu.memory_space<vmem>>, vector<1x128xf32>
    %126 = vector.broadcast %94 : vector<8x1xf32> to vector<8x128xf32>
    %127 = vector.broadcast %125 : vector<1x128xf32> to vector<8x128xf32>
    %128 = arith.mulf %126, %127 : vector<8x128xf32>
    %129 = arith.addf %124, %128 : vector<8x128xf32>
    %c45 = arith.constant 45 : index
    %c0_27 = arith.constant 0 : index
    %130 = vector.load %arg3[%c45, %c0_27] : memref<112x128xf32, #tpu.memory_space<vmem>>, vector<1x128xf32>
    %131 = vector.broadcast %95 : vector<8x1xf32> to vector<8x128xf32>
    %132 = vector.broadcast %130 : vector<1x128xf32> to vector<8x128xf32>
    %133 = arith.mulf %131, %132 : vector<8x128xf32>
    %134 = arith.addf %129, %133 : vector<8x128xf32>
    %c46 = arith.constant 46 : index
    %c0_28 = arith.constant 0 : index
    %135 = vector.load %arg3[%c46, %c0_28] : memref<112x128xf32, #tpu.memory_space<vmem>>, vector<1x128xf32>
    %136 = vector.broadcast %96 : vector<8x1xf32> to vector<8x128xf32>
    %137 = vector.broadcast %135 : vector<1x128xf32> to vector<8x128xf32>
    %138 = arith.mulf %136, %137 : vector<8x128xf32>
    %139 = arith.addf %134, %138 : vector<8x128xf32>
    %c47 = arith.constant 47 : index
    %c0_29 = arith.constant 0 : index
    %140 = vector.load %arg3[%c47, %c0_29] : memref<112x128xf32, #tpu.memory_space<vmem>>, vector<1x128xf32>
    %141 = vector.broadcast %97 : vector<8x1xf32> to vector<8x128xf32>
    %142 = vector.broadcast %140 : vector<1x128xf32> to vector<8x128xf32>
    %143 = arith.mulf %141, %142 : vector<8x128xf32>
    %144 = arith.addf %139, %143 : vector<8x128xf32>
    %c48 = arith.constant 48 : index
    %c0_30 = arith.constant 0 : index
    %145 = vector.load %arg3[%c48, %c0_30] : memref<112x128xf32, #tpu.memory_space<vmem>>, vector<1x128xf32>
    %146 = vector.broadcast %98 : vector<8x1xf32> to vector<8x128xf32>
    %147 = vector.broadcast %145 : vector<1x128xf32> to vector<8x128xf32>
    %148 = arith.mulf %146, %147 : vector<8x128xf32>
    %149 = arith.addf %144, %148 : vector<8x128xf32>
    %c49 = arith.constant 49 : index
    %c0_31 = arith.constant 0 : index
    %150 = vector.load %arg3[%c49, %c0_31] : memref<112x128xf32, #tpu.memory_space<vmem>>, vector<1x128xf32>
    %151 = vector.broadcast %99 : vector<8x1xf32> to vector<8x128xf32>
    %152 = vector.broadcast %150 : vector<1x128xf32> to vector<8x128xf32>
    %153 = arith.mulf %151, %152 : vector<8x128xf32>
    %154 = arith.addf %149, %153 : vector<8x128xf32>
    %c50 = arith.constant 50 : index
    %c0_32 = arith.constant 0 : index
    %155 = vector.load %arg3[%c50, %c0_32] : memref<112x128xf32, #tpu.memory_space<vmem>>, vector<1x128xf32>
    %156 = vector.broadcast %100 : vector<8x1xf32> to vector<8x128xf32>
    %157 = vector.broadcast %155 : vector<1x128xf32> to vector<8x128xf32>
    %158 = arith.mulf %156, %157 : vector<8x128xf32>
    %159 = arith.addf %154, %158 : vector<8x128xf32>
    %c51 = arith.constant 51 : index
    %c0_33 = arith.constant 0 : index
    %160 = vector.load %arg3[%c51, %c0_33] : memref<112x128xf32, #tpu.memory_space<vmem>>, vector<1x128xf32>
    %161 = vector.broadcast %101 : vector<8x1xf32> to vector<8x128xf32>
    %162 = vector.broadcast %160 : vector<1x128xf32> to vector<8x128xf32>
    %163 = arith.mulf %161, %162 : vector<8x128xf32>
    %164 = arith.addf %159, %163 : vector<8x128xf32>
    %c52 = arith.constant 52 : index
    %c0_34 = arith.constant 0 : index
    %165 = vector.load %arg3[%c52, %c0_34] : memref<112x128xf32, #tpu.memory_space<vmem>>, vector<1x128xf32>
    %166 = vector.broadcast %102 : vector<8x1xf32> to vector<8x128xf32>
    %167 = vector.broadcast %165 : vector<1x128xf32> to vector<8x128xf32>
    %168 = arith.mulf %166, %167 : vector<8x128xf32>
    %169 = arith.addf %164, %168 : vector<8x128xf32>
    %cst_35 = arith.constant 0.000000e+00 : f32
    %170 = vector.broadcast %cst_35 : f32 to vector<8x128xf32>
    %171 = arith.maximumf %169, %170 : vector<8x128xf32>
    %172 = vector.extract_strided_slice %171 {offsets = [0, 0], sizes = [8, 1], strides = [1, 1]} : vector<8x128xf32> to vector<8x1xf32>
    %173 = vector.extract_strided_slice %171 {offsets = [0, 1], sizes = [8, 1], strides = [1, 1]} : vector<8x128xf32> to vector<8x1xf32>
    %174 = vector.extract_strided_slice %171 {offsets = [0, 2], sizes = [8, 1], strides = [1, 1]} : vector<8x128xf32> to vector<8x1xf32>
    %175 = vector.extract_strided_slice %171 {offsets = [0, 3], sizes = [8, 1], strides = [1, 1]} : vector<8x128xf32> to vector<8x1xf32>
    %176 = vector.extract_strided_slice %171 {offsets = [0, 4], sizes = [8, 1], strides = [1, 1]} : vector<8x128xf32> to vector<8x1xf32>
    %177 = vector.extract_strided_slice %171 {offsets = [0, 5], sizes = [8, 1], strides = [1, 1]} : vector<8x128xf32> to vector<8x1xf32>
    %178 = vector.extract_strided_slice %171 {offsets = [0, 6], sizes = [8, 1], strides = [1, 1]} : vector<8x128xf32> to vector<8x1xf32>
    %179 = vector.extract_strided_slice %171 {offsets = [0, 7], sizes = [8, 1], strides = [1, 1]} : vector<8x128xf32> to vector<8x1xf32>
    %180 = vector.extract_strided_slice %171 {offsets = [0, 8], sizes = [8, 1], strides = [1, 1]} : vector<8x128xf32> to vector<8x1xf32>
    %181 = vector.extract_strided_slice %171 {offsets = [0, 9], sizes = [8, 1], strides = [1, 1]} : vector<8x128xf32> to vector<8x1xf32>
    %c80 = arith.constant 80 : index
    %c0_36 = arith.constant 0 : index
    %182 = vector.load %arg3[%c80, %c0_36] : memref<112x128xf32, #tpu.memory_space<vmem>>, vector<1x128xf32>
    %c64 = arith.constant 64 : index
    %c0_37 = arith.constant 0 : index
    %183 = vector.load %arg3[%c64, %c0_37] : memref<112x128xf32, #tpu.memory_space<vmem>>, vector<1x128xf32>
    %184 = vector.broadcast %172 : vector<8x1xf32> to vector<8x128xf32>
    %185 = vector.broadcast %183 : vector<1x128xf32> to vector<8x128xf32>
    %186 = arith.mulf %184, %185 : vector<8x128xf32>
    %187 = vector.broadcast %182 : vector<1x128xf32> to vector<8x128xf32>
    %188 = arith.addf %187, %186 : vector<8x128xf32>
    %c65 = arith.constant 65 : index
    %c0_38 = arith.constant 0 : index
    %189 = vector.load %arg3[%c65, %c0_38] : memref<112x128xf32, #tpu.memory_space<vmem>>, vector<1x128xf32>
    %190 = vector.broadcast %173 : vector<8x1xf32> to vector<8x128xf32>
    %191 = vector.broadcast %189 : vector<1x128xf32> to vector<8x128xf32>
    %192 = arith.mulf %190, %191 : vector<8x128xf32>
    %193 = arith.addf %188, %192 : vector<8x128xf32>
    %c66 = arith.constant 66 : index
    %c0_39 = arith.constant 0 : index
    %194 = vector.load %arg3[%c66, %c0_39] : memref<112x128xf32, #tpu.memory_space<vmem>>, vector<1x128xf32>
    %195 = vector.broadcast %174 : vector<8x1xf32> to vector<8x128xf32>
    %196 = vector.broadcast %194 : vector<1x128xf32> to vector<8x128xf32>
    %197 = arith.mulf %195, %196 : vector<8x128xf32>
    %198 = arith.addf %193, %197 : vector<8x128xf32>
    %c67 = arith.constant 67 : index
    %c0_40 = arith.constant 0 : index
    %199 = vector.load %arg3[%c67, %c0_40] : memref<112x128xf32, #tpu.memory_space<vmem>>, vector<1x128xf32>
    %200 = vector.broadcast %175 : vector<8x1xf32> to vector<8x128xf32>
    %201 = vector.broadcast %199 : vector<1x128xf32> to vector<8x128xf32>
    %202 = arith.mulf %200, %201 : vector<8x128xf32>
    %203 = arith.addf %198, %202 : vector<8x128xf32>
    %c68 = arith.constant 68 : index
    %c0_41 = arith.constant 0 : index
    %204 = vector.load %arg3[%c68, %c0_41] : memref<112x128xf32, #tpu.memory_space<vmem>>, vector<1x128xf32>
    %205 = vector.broadcast %176 : vector<8x1xf32> to vector<8x128xf32>
    %206 = vector.broadcast %204 : vector<1x128xf32> to vector<8x128xf32>
    %207 = arith.mulf %205, %206 : vector<8x128xf32>
    %208 = arith.addf %203, %207 : vector<8x128xf32>
    %c69 = arith.constant 69 : index
    %c0_42 = arith.constant 0 : index
    %209 = vector.load %arg3[%c69, %c0_42] : memref<112x128xf32, #tpu.memory_space<vmem>>, vector<1x128xf32>
    %210 = vector.broadcast %177 : vector<8x1xf32> to vector<8x128xf32>
    %211 = vector.broadcast %209 : vector<1x128xf32> to vector<8x128xf32>
    %212 = arith.mulf %210, %211 : vector<8x128xf32>
    %213 = arith.addf %208, %212 : vector<8x128xf32>
    %c70 = arith.constant 70 : index
    %c0_43 = arith.constant 0 : index
    %214 = vector.load %arg3[%c70, %c0_43] : memref<112x128xf32, #tpu.memory_space<vmem>>, vector<1x128xf32>
    %215 = vector.broadcast %178 : vector<8x1xf32> to vector<8x128xf32>
    %216 = vector.broadcast %214 : vector<1x128xf32> to vector<8x128xf32>
    %217 = arith.mulf %215, %216 : vector<8x128xf32>
    %218 = arith.addf %213, %217 : vector<8x128xf32>
    %c71 = arith.constant 71 : index
    %c0_44 = arith.constant 0 : index
    %219 = vector.load %arg3[%c71, %c0_44] : memref<112x128xf32, #tpu.memory_space<vmem>>, vector<1x128xf32>
    %220 = vector.broadcast %179 : vector<8x1xf32> to vector<8x128xf32>
    %221 = vector.broadcast %219 : vector<1x128xf32> to vector<8x128xf32>
    %222 = arith.mulf %220, %221 : vector<8x128xf32>
    %223 = arith.addf %218, %222 : vector<8x128xf32>
    %c72 = arith.constant 72 : index
    %c0_45 = arith.constant 0 : index
    %224 = vector.load %arg3[%c72, %c0_45] : memref<112x128xf32, #tpu.memory_space<vmem>>, vector<1x128xf32>
    %225 = vector.broadcast %180 : vector<8x1xf32> to vector<8x128xf32>
    %226 = vector.broadcast %224 : vector<1x128xf32> to vector<8x128xf32>
    %227 = arith.mulf %225, %226 : vector<8x128xf32>
    %228 = arith.addf %223, %227 : vector<8x128xf32>
    %c73 = arith.constant 73 : index
    %c0_46 = arith.constant 0 : index
    %229 = vector.load %arg3[%c73, %c0_46] : memref<112x128xf32, #tpu.memory_space<vmem>>, vector<1x128xf32>
    %230 = vector.broadcast %181 : vector<8x1xf32> to vector<8x128xf32>
    %231 = vector.broadcast %229 : vector<1x128xf32> to vector<8x128xf32>
    %232 = arith.mulf %230, %231 : vector<8x128xf32>
    %233 = arith.addf %228, %232 : vector<8x128xf32>
    %cst_47 = arith.constant 0.000000e+00 : f32
    %234 = vector.broadcast %cst_47 : f32 to vector<8x128xf32>
    %235 = arith.maximumf %233, %234 : vector<8x128xf32>
    %236 = vector.extract_strided_slice %235 {offsets = [0, 0], sizes = [8, 1], strides = [1, 1]} : vector<8x128xf32> to vector<8x1xf32>
    %237 = vector.extract_strided_slice %235 {offsets = [0, 1], sizes = [8, 1], strides = [1, 1]} : vector<8x128xf32> to vector<8x1xf32>
    %238 = vector.extract_strided_slice %235 {offsets = [0, 2], sizes = [8, 1], strides = [1, 1]} : vector<8x128xf32> to vector<8x1xf32>
    %239 = vector.extract_strided_slice %235 {offsets = [0, 3], sizes = [8, 1], strides = [1, 1]} : vector<8x128xf32> to vector<8x1xf32>
    %240 = vector.extract_strided_slice %235 {offsets = [0, 4], sizes = [8, 1], strides = [1, 1]} : vector<8x128xf32> to vector<8x1xf32>
    %241 = vector.extract_strided_slice %235 {offsets = [0, 5], sizes = [8, 1], strides = [1, 1]} : vector<8x128xf32> to vector<8x1xf32>
    %242 = vector.extract_strided_slice %235 {offsets = [0, 6], sizes = [8, 1], strides = [1, 1]} : vector<8x128xf32> to vector<8x1xf32>
    %243 = vector.extract_strided_slice %235 {offsets = [0, 7], sizes = [8, 1], strides = [1, 1]} : vector<8x128xf32> to vector<8x1xf32>
    %244 = vector.extract_strided_slice %235 {offsets = [0, 8], sizes = [8, 1], strides = [1, 1]} : vector<8x128xf32> to vector<8x1xf32>
    %245 = vector.extract_strided_slice %235 {offsets = [0, 9], sizes = [8, 1], strides = [1, 1]} : vector<8x128xf32> to vector<8x1xf32>
    %c104 = arith.constant 104 : index
    %c0_48 = arith.constant 0 : index
    %246 = vector.load %arg3[%c104, %c0_48] : memref<112x128xf32, #tpu.memory_space<vmem>>, vector<1x128xf32>
    %c88 = arith.constant 88 : index
    %c0_49 = arith.constant 0 : index
    %247 = vector.load %arg3[%c88, %c0_49] : memref<112x128xf32, #tpu.memory_space<vmem>>, vector<1x128xf32>
    %248 = vector.broadcast %236 : vector<8x1xf32> to vector<8x128xf32>
    %249 = vector.broadcast %247 : vector<1x128xf32> to vector<8x128xf32>
    %250 = arith.mulf %248, %249 : vector<8x128xf32>
    %251 = vector.broadcast %246 : vector<1x128xf32> to vector<8x128xf32>
    %252 = arith.addf %251, %250 : vector<8x128xf32>
    %c89 = arith.constant 89 : index
    %c0_50 = arith.constant 0 : index
    %253 = vector.load %arg3[%c89, %c0_50] : memref<112x128xf32, #tpu.memory_space<vmem>>, vector<1x128xf32>
    %254 = vector.broadcast %237 : vector<8x1xf32> to vector<8x128xf32>
    %255 = vector.broadcast %253 : vector<1x128xf32> to vector<8x128xf32>
    %256 = arith.mulf %254, %255 : vector<8x128xf32>
    %257 = arith.addf %252, %256 : vector<8x128xf32>
    %c90 = arith.constant 90 : index
    %c0_51 = arith.constant 0 : index
    %258 = vector.load %arg3[%c90, %c0_51] : memref<112x128xf32, #tpu.memory_space<vmem>>, vector<1x128xf32>
    %259 = vector.broadcast %238 : vector<8x1xf32> to vector<8x128xf32>
    %260 = vector.broadcast %258 : vector<1x128xf32> to vector<8x128xf32>
    %261 = arith.mulf %259, %260 : vector<8x128xf32>
    %262 = arith.addf %257, %261 : vector<8x128xf32>
    %c91 = arith.constant 91 : index
    %c0_52 = arith.constant 0 : index
    %263 = vector.load %arg3[%c91, %c0_52] : memref<112x128xf32, #tpu.memory_space<vmem>>, vector<1x128xf32>
    %264 = vector.broadcast %239 : vector<8x1xf32> to vector<8x128xf32>
    %265 = vector.broadcast %263 : vector<1x128xf32> to vector<8x128xf32>
    %266 = arith.mulf %264, %265 : vector<8x128xf32>
    %267 = arith.addf %262, %266 : vector<8x128xf32>
    %c92 = arith.constant 92 : index
    %c0_53 = arith.constant 0 : index
    %268 = vector.load %arg3[%c92, %c0_53] : memref<112x128xf32, #tpu.memory_space<vmem>>, vector<1x128xf32>
    %269 = vector.broadcast %240 : vector<8x1xf32> to vector<8x128xf32>
    %270 = vector.broadcast %268 : vector<1x128xf32> to vector<8x128xf32>
    %271 = arith.mulf %269, %270 : vector<8x128xf32>
    %272 = arith.addf %267, %271 : vector<8x128xf32>
    %c93 = arith.constant 93 : index
    %c0_54 = arith.constant 0 : index
    %273 = vector.load %arg3[%c93, %c0_54] : memref<112x128xf32, #tpu.memory_space<vmem>>, vector<1x128xf32>
    %274 = vector.broadcast %241 : vector<8x1xf32> to vector<8x128xf32>
    %275 = vector.broadcast %273 : vector<1x128xf32> to vector<8x128xf32>
    %276 = arith.mulf %274, %275 : vector<8x128xf32>
    %277 = arith.addf %272, %276 : vector<8x128xf32>
    %c94 = arith.constant 94 : index
    %c0_55 = arith.constant 0 : index
    %278 = vector.load %arg3[%c94, %c0_55] : memref<112x128xf32, #tpu.memory_space<vmem>>, vector<1x128xf32>
    %279 = vector.broadcast %242 : vector<8x1xf32> to vector<8x128xf32>
    %280 = vector.broadcast %278 : vector<1x128xf32> to vector<8x128xf32>
    %281 = arith.mulf %279, %280 : vector<8x128xf32>
    %282 = arith.addf %277, %281 : vector<8x128xf32>
    %c95 = arith.constant 95 : index
    %c0_56 = arith.constant 0 : index
    %283 = vector.load %arg3[%c95, %c0_56] : memref<112x128xf32, #tpu.memory_space<vmem>>, vector<1x128xf32>
    %284 = vector.broadcast %243 : vector<8x1xf32> to vector<8x128xf32>
    %285 = vector.broadcast %283 : vector<1x128xf32> to vector<8x128xf32>
    %286 = arith.mulf %284, %285 : vector<8x128xf32>
    %287 = arith.addf %282, %286 : vector<8x128xf32>
    %c96 = arith.constant 96 : index
    %c0_57 = arith.constant 0 : index
    %288 = vector.load %arg3[%c96, %c0_57] : memref<112x128xf32, #tpu.memory_space<vmem>>, vector<1x128xf32>
    %289 = vector.broadcast %244 : vector<8x1xf32> to vector<8x128xf32>
    %290 = vector.broadcast %288 : vector<1x128xf32> to vector<8x128xf32>
    %291 = arith.mulf %289, %290 : vector<8x128xf32>
    %292 = arith.addf %287, %291 : vector<8x128xf32>
    %c97 = arith.constant 97 : index
    %c0_58 = arith.constant 0 : index
    %293 = vector.load %arg3[%c97, %c0_58] : memref<112x128xf32, #tpu.memory_space<vmem>>, vector<1x128xf32>
    %294 = vector.broadcast %245 : vector<8x1xf32> to vector<8x128xf32>
    %295 = vector.broadcast %293 : vector<1x128xf32> to vector<8x128xf32>
    %296 = arith.mulf %294, %295 : vector<8x128xf32>
    %297 = arith.addf %292, %296 : vector<8x128xf32>
    %cst_59 = arith.constant dense<0xFF800000> : vector<8xf32>
    %298 = vector.multi_reduction <maximumf>, %297, %cst_59 [1] : vector<8x128xf32> to vector<8xf32>
    %299 = vector.shape_cast %298 : vector<8xf32> to vector<8x1xf32>
    %300 = vector.broadcast %299 : vector<8x1xf32> to vector<8x128xf32>
    %301 = arith.subf %297, %300 : vector<8x128xf32>
    %302 = math.exp %301 : vector<8x128xf32>
    %cst_60 = arith.constant dense<0.000000e+00> : vector<8xf32>
    %303 = vector.multi_reduction <add>, %302, %cst_60 [1] : vector<8x128xf32> to vector<8xf32>
    %304 = vector.shape_cast %303 : vector<8xf32> to vector<8x1xf32>
    %305 = vector.broadcast %304 : vector<8x1xf32> to vector<8x128xf32>
    %306 = arith.divf %302, %305 : vector<8x128xf32>
    %c0_61 = arith.constant 0 : index
    %c0_62 = arith.constant 0 : index
    %307 = vector.load %arg4[%c0_61, %c0_62] : memref<8x128xf32, #tpu.memory_space<vmem>>, vector<8x128xf32>
    tpu.vector_store %arg4[%c0_61, %c0_62], %306 {strides = array<i32>} : memref<8x128xf32, #tpu.memory_space<vmem>>, vector<8x128xf32>,
    return
  }
  func.func @transform_0(%arg0: i32) -> (i32, i32) {
    %c0_i32 = arith.constant 0 : i32
    %c0_i32_0 = arith.constant 0 : i32
    return %arg0, %c0_i32 : i32, i32
  }
  func.func @transform_1(%arg0: i32) -> (i32, i32) {
    %c0_i32 = arith.constant 0 : i32
    %c0_i32_0 = arith.constant 0 : i32
    return %arg0, %c0_i32 : i32, i32
  }
  func.func @transform_2(%arg0: i32) -> (i32, i32) {
    %c0_i32 = arith.constant 0 : i32
    %c0_i32_0 = arith.constant 0 : i32
    %c0_i32_1 = arith.constant 0 : i32
    return %c0_i32, %c0_i32_0 : i32, i32
  }
  func.func @transform_3(%arg0: i32) -> (i32, i32) {
    %c0_i32 = arith.constant 0 : i32
    %c0_i32_0 = arith.constant 0 : i32
    return %arg0, %c0_i32 : i32, i32
  }
}

</mosaic_0001>

<bundles_post_ra>
// kernel: forward.1
= control target key start
LH: loop header
LB: loop body
LE: loop exit
PB: predicated region body
PF: predicated region fallthrough
CT: control target
= control target key end

     0   :  { %8 = vsyncpa [#allocation3], 0  ;;  %s865_s0 = inlined_call_operand.vmem [shape: f32[8,3], index: 0, kind: input, shape index: {}]   ;;  %s866_s1 = inlined_call_operand.vmem [shape: f32[8,1], index: 1, kind: input, shape index: {}]   ;;  %s867_s2 = inlined_call_operand.hbm [shape: f32[112,128], index: 2, kind: input, shape index: {}]   ;;  %s868_s3 = inlined_call_operand.hbm [shape: f32[8,128], index: 3, kind: output, shape index: {}]  }
   0x1   :  { %9 = vsyncpa [#allocation4], 0  ;;  %s756_s12 = smov [#allocation2]   ;;  %s708_s16 = scalar_lea.hbm %s867_s2, 1792 }
   0x2   :  { %s19_s13 = sshll.u32 %s756_s12, 4  ;;  %p709_p0 = scmp.ne.s32.totalorder %s867_s2, %s708_s16  ;;  %s20_s13 = int_to_ptr.vmem [resolvable:$true] %s19_s13 }
   0x3   :  { %p712_p1 = scmp.lt.u32.totalorder %s708_s16, %s867_s2 }
   0x5   :  { %p714_p2 = pnand %p712_p1, %p709_p0 }
   0x7   :  { %717 = shalt.err (!%p714_p2)
}
   0x8   :  { %s718_s21 = scalar_lea.vmem %s20_s13, 1792  ;;  %p723_p4 = scmp.lt.s32.totalorder %s20_s13, %s20_s13 }
   0x9   :  { %p719_p3 = scmp.ne.s32.totalorder %s20_s13, %s718_s21  ;;  %p724_p5 = scmp.lt.s32.totalorder %s718_s21, %s718_s21 }
   0xb   :  { %p725_p6 = por %p724_p5, %p723_p4 }
   0xd   :  { %p726_p7 = pnand %p725_p6, %p719_p3 }
   0xf   :  { %729 = shalt.err (!%p726_p7)
}
  0x10   :  { %s757_s22 = smov 128   ;;  %s758_s23 = smov 8  }
  0x11   :  { %25 = dma.hbm_to_vmem [thread:$0]  %s867_s2, 1792, %s20_s13, [#allocation3], %s757_s22, %s757_s22, %s758_s23  }
  0x12   :  { %752 = dma.done.wait [#allocation3], 1792  }
  0x13   :  { %753 = vsyncadd [#allocation3], 4294965504  ;;  %v759_v0 = vmov 0   ;;  %v760_v1 = vmov 2   ;;  %v29_v2 = vld [vmem:[%s865_s0] sm:$0xff]  ;;  %v761_v4 = vmov 1  }
  0x14   :  { %662 = vset.pattern.permute.xlu0 %v759_v0  ;;  %664 = vset.pattern.permute.xlu1 %v760_v1  ;;  %v30_v3 = vld [vmem:[%s866_s1] sm:$0xff]  ;;  %v612_v6 = vld [vmem:[#allocation2 + $0x28] ss:$0 sm:$0xff]  ;;  %v613_v12 = vld [vmem:[#allocation2 + $0x38] ss:$0 sm:$0xff]  ;;  %v762_v33 = vmov 3  }
  0x15   :  { %35 = vperm.xlu0 %662, %v29_v2   ;;  %61 = vperm.xlu1 %664, %v29_v2   ;;  %v596_v5 = vld [vmem:[#allocation2] ss:$0 sm:$0xff]  ;;  %v597_v9 = vld [vmem:[#allocation2 + $0x8] ss:$0 sm:$0xff]  ;;  %v598_v13 = vld [vmem:[#allocation2 + $0x1] ss:$0 sm:$0xff] }
  0x16   :  { %v614_v14 = vld [vmem:[#allocation2 + $0x29] ss:$0 sm:$0xff]  ;;  %v599_v15 = vld [vmem:[#allocation2 + $0x2] ss:$0 sm:$0xff]  ;;  %v615_v16 = vld [vmem:[#allocation2 + $0x2a] ss:$0 sm:$0xff] }
  0x17   :  { %v600_v18 = vld [vmem:[#allocation2 + $0x3] ss:$0 sm:$0xff]  ;;  %v763_v34 = vmov 6   ;;  %v764_v35 = vmov 4   ;;  %v765_v36 = vmov 9   ;;  %v766_v37 = vmov 5  }
  0x18   :  { %v767_v38 = vmov 7   ;;  %v768_v39 = vmov 8   ;;  %v601_v40 = vld [vmem:[#allocation2 + $0x10] ss:$0 sm:$0xff]  ;;  %v603_v41 = vld [vmem:[#allocation2 + $0x11] ss:$0 sm:$0xff] }
  0x19   :  { %663 = vset.pattern.permute.xlu0 %v761_v4  ;;  %665 = vset.pattern.permute.xlu1 %v759_v0  ;;  %v602_v43 = vld [vmem:[#allocation2 + $0x20] ss:$0 sm:$0xff]  ;;  %v604_v48 = vld [vmem:[#allocation2 + $0x12] ss:$0 sm:$0xff]  ;;  %v605_v52 = vld [vmem:[#allocation2 + $0x13] ss:$0 sm:$0xff] }
  0x1a   :  { %50 = vperm.xlu0 %663, %v29_v2   ;;  %73 = vperm.xlu1 %665, %v30_v3   ;;  %v606_v55 = vld [vmem:[#allocation2 + $0x14] ss:$0 sm:$0xff]  ;;  %v607_v60 = vld [vmem:[#allocation2 + $0x15] ss:$0 sm:$0xff]  ;;  %v608_v2 = vld [vmem:[#allocation2 + $0x16] ss:$0 sm:$0xff] }
  0x1b   :  { %s769_s0 = smov [#allocation5]  }
  0x1c   :  { %s587_s1 = sshll.u32 %s769_s0, 4  ;;  %s588_s1 = int_to_ptr.vmem [resolvable:$true] %s587_s1 }
  0x1d   :  { %s730_s2 = scalar_lea.vmem %s588_s1, 128  ;;  %p735_p9 = scmp.lt.s32.totalorder %s588_s1, %s588_s1 }
  0x1e   :  { %p731_p8 = scmp.ne.s32.totalorder %s588_s1, %s730_s2  ;;  %p736_p10 = scmp.lt.s32.totalorder %s730_s2, %s730_s2 }
  0x20   :  { %p737_p11 = por %p736_p10, %p735_p9 }
  0x22   :  { %p738_p12 = pnand %p737_p11, %p731_p8 }
  0x94   :  { %v36_v7 = vpop.permute.xlu0 %35  ;;  %v62_v8 = vpop.permute.xlu1 %61 }
  0x95   :  { %v42_v10 = vmul.f32 %v596_v5, %v36_v7  ;;  %v206_v11 = vmul.f32 %v612_v6, %v36_v7  ;;  %v68_v24 = vmul.f32 %v599_v15, %v62_v8  ;;  %v224_v25 = vmul.f32 %v615_v16, %v62_v8  ;;  %v609_v6 = vld [vmem:[#allocation2 + $0x17] ss:$0 sm:$0xff] }
  0x97   :  { %v47_v20 = vadd.f32 %v597_v9, %v42_v10  ;;  %v211_v21 = vadd.f32 %v613_v12, %v206_v11  ;;  %v610_v11 = vld [vmem:[#allocation2 + $0x18] ss:$0 sm:$0xff]  ;;  %v611_v12 = vld [vmem:[#allocation2 + $0x19] ss:$0 sm:$0xff] }
  0x99   :  { %v51_v17 = vpop.permute.xlu0 %50  ;;  %v74_v19 = vpop.permute.xlu1 %73 }
  0x9a   :  { %v57_v22 = vmul.f32 %v598_v13, %v51_v17  ;;  %v217_v23 = vmul.f32 %v614_v14, %v51_v17  ;;  %v80_v28 = vmul.f32 %v600_v18, %v74_v19 }
  0x9c   :  { %v58_v26 = vadd.f32 %v57_v22, %v47_v20  ;;  %v218_v27 = vadd.f32 %v217_v23, %v211_v21  ;;  %v616_v21 = vld [vmem:[#allocation2 + $0x2b] ss:$0 sm:$0xff] }
  0x9e   :  { %v69_v29 = vadd.f32 %v68_v24, %v58_v26  ;;  %v812_v30 = vadd.f32 %v224_v25, %v218_v27  ;;  %v617_v24 = vld [vmem:[#allocation2 + $0x2c] ss:$0 sm:$0xff] }
  0xa0   :  { %v81_v31 = vadd.f32 %v80_v28, %v69_v29  ;;  %v618_v28 = vld [vmem:[#allocation2 + $0x2d] ss:$0 sm:$0xff] }
  0xa2   :  { %v82_v32 = vmax.f32 %v81_v31, 0.0 }
  0xa4   :  { %102 = vperm.xlu0 %663, %v82_v32   ;;  %87 = vperm.xlu1 %665, %v82_v32  }
  0xa8   :  { %667 = vset.pattern.permute.xlu0 %v762_v33  ;;  %666 = vset.pattern.permute.xlu1 %v760_v1 }
  0xa9   :  { %124 = vperm.xlu0 %667, %v82_v32   ;;  %113 = vperm.xlu1 %666, %v82_v32  }
  0xad   :  { %670 = vset.pattern.permute.xlu0 %v763_v34  ;;  %668 = vset.pattern.permute.xlu1 %v764_v35 }
  0xae   :  { %157 = vperm.xlu0 %670, %v82_v32   ;;  %135 = vperm.xlu1 %668, %v82_v32  }
  0xb2   :  { %673 = vset.pattern.permute.xlu0 %v765_v36  ;;  %669 = vset.pattern.permute.xlu1 %v766_v37 }
  0xb3   :  { %190 = vperm.xlu0 %673, %v82_v32   ;;  %146 = vperm.xlu1 %669, %v82_v32  }
  0xb7   :  { %671 = vset.pattern.permute.xlu1 %v767_v38  ;;  %676 = vset.pattern.permute.xlu0 %v760_v1 }
  0xb8   :  { %168 = vperm.xlu1 %671, %v82_v32  }
  0xbc   :  { %672 = vset.pattern.permute.xlu1 %v768_v39 }
  0xbd   :  { %179 = vperm.xlu1 %672, %v82_v32   ;;  %v619_v32 = vld [vmem:[#allocation2 + $0x2e] ss:$0 sm:$0xff] }
  0xc1   :  { %674 = vset.pattern.permute.xlu1 %v759_v0 }
 0x123   :  { %v103_v42 = vpop.permute.xlu0 %102  ;;  %v88_v44 = vpop.permute.xlu1 %87 }
 0x124   :  { %v94_v45 = vmul.f32 %v601_v40, %v88_v44  ;;  %v109_v46 = vmul.f32 %v603_v41, %v103_v42  ;;  %v620_v44 = vld [vmem:[#allocation2 + $0x2f] ss:$0 sm:$0xff] }
 0x126   :  { %v99_v47 = vadd.f32 %v602_v43, %v94_v45 }
 0x128   :  { %v110_v49 = vadd.f32 %v109_v46, %v99_v47  ;;  %v114_v50 = vpop.permute.xlu1 %113  ;;  %v125_v53 = vpop.permute.xlu0 %124 }
 0x129   :  { %v120_v51 = vmul.f32 %v604_v48, %v114_v50  ;;  %v131_v56 = vmul.f32 %v605_v52, %v125_v53  ;;  %v621_v48 = vld [vmem:[#allocation2 + $0x30] ss:$0 sm:$0xff] }
 0x12b   :  { %v121_v54 = vadd.f32 %v120_v51, %v110_v49  ;;  %v622_v51 = vld [vmem:[#allocation2 + $0x31] ss:$0 sm:$0xff] }
 0x12d   :  { %v136_v57 = vpop.permute.xlu1 %135  ;;  %v132_v58 = vadd.f32 %v131_v56, %v121_v54  ;;  %v158_v3 = vpop.permute.xlu0 %157  ;;  %v624_v56 = vld [vmem:[#allocation2 + $0x33] ss:$0 sm:$0xff] }
 0x12e   :  { %v142_v59 = vmul.f32 %v606_v55, %v136_v57  ;;  %v164_v7 = vmul.f32 %v608_v2, %v158_v3  ;;  %v623_v55 = vld [vmem:[#allocation2 + $0x32] ss:$0 sm:$0xff] }
 0x130   :  { %v143_v62 = vadd.f32 %v142_v59, %v132_v58 }
 0x132   :  { %v147_v61 = vpop.permute.xlu1 %146  ;;  %v191_v13 = vpop.permute.xlu0 %190 }
 0x133   :  { %v153_v63 = vmul.f32 %v607_v60, %v147_v61  ;;  %v197_v17 = vmul.f32 %v611_v12, %v191_v13  ;;  %v628_v12 = vld [vmem:[#allocation2 + $0x41] ss:$0 sm:$0xff] }
 0x135   :  { %v154_v5 = vadd.f32 %v153_v63, %v143_v62  ;;  %v625_v63 = vld [vmem:[#allocation2 + $0x34] ss:$0 sm:$0xff] }
 0x137   :  { %v169_v8 = vpop.permute.xlu1 %168  ;;  %v165_v9 = vadd.f32 %v164_v7, %v154_v5 }
 0x138   :  { %v175_v10 = vmul.f32 %v609_v6, %v169_v8  ;;  %v626_v8 = vld [vmem:[#allocation2 + $0x40] ss:$0 sm:$0xff] }
 0x13a   :  { %v176_v15 = vadd.f32 %v175_v10, %v165_v9  ;;  %v627_v9 = vld [vmem:[#allocation2 + $0x50] ss:$0 sm:$0xff] }
 0x13c   :  { %v180_v14 = vpop.permute.xlu1 %179 }
 0x13d   :  { %v186_v16 = vmul.f32 %v610_v11, %v180_v14 }
 0x13f   :  { %v187_v18 = vadd.f32 %v186_v16, %v176_v15 }
 0x141   :  { %v198_v19 = vadd.f32 %v197_v17, %v187_v18 }
 0x143   :  { %v199_v20 = vmax.f32 %v198_v19, 0.0  ;;  %v630_v19 = vld [vmem:[#allocation2 + $0x43] ss:$0 sm:$0xff] }
 0x145   :  { %251 = vperm.xlu0 %676, %v199_v20   ;;  %229 = vperm.xlu1 %674, %v199_v20  }
 0x149   :  { %679 = vset.pattern.permute.xlu0 %v766_v37  ;;  %675 = vset.pattern.permute.xlu1 %v761_v4 }
 0x14a   :  { %284 = vperm.xlu0 %679, %v199_v20   ;;  %240 = vperm.xlu1 %675, %v199_v20  }
 0x14e   :  { %682 = vset.pattern.permute.xlu0 %v768_v39  ;;  %677 = vset.pattern.permute.xlu1 %v762_v33 }
 0x14f   :  { %317 = vperm.xlu0 %682, %v199_v20   ;;  %262 = vperm.xlu1 %677, %v199_v20  }
 0x153   :  { %678 = vset.pattern.permute.xlu1 %v764_v35  ;;  %685 = vset.pattern.permute.xlu0 %v761_v4 }
 0x154   :  { %273 = vperm.xlu1 %678, %v199_v20  }
 0x158   :  { %680 = vset.pattern.permute.xlu1 %v763_v34 }
 0x159   :  { %295 = vperm.xlu1 %680, %v199_v20  }
 0x15d   :  { %681 = vset.pattern.permute.xlu1 %v767_v38 }
 0x15e   :  { %306 = vperm.xlu1 %681, %v199_v20  }
 0x162   :  { %683 = vset.pattern.permute.xlu1 %v765_v36 }
 0x163   :  { %328 = vperm.xlu1 %683, %v199_v20  }
 0x167   :  { %684 = vset.pattern.permute.xlu1 %v759_v0 }
 0x1c4   :  { %v230_v22 = vpop.permute.xlu1 %229  ;;  %v252_v29 = vpop.permute.xlu0 %251 }
 0x1c5   :  { %v236_v23 = vmul.f32 %v616_v21, %v230_v22  ;;  %v258_v40 = vmul.f32 %v618_v28, %v252_v29 }
 0x1c7   :  { %v237_v26 = vadd.f32 %v236_v23, %v812_v30  ;;  %v631_v23 = vld [vmem:[#allocation2 + $0x44] ss:$0 sm:$0xff] }
 0x1c9   :  { %v241_v25 = vpop.permute.xlu1 %240  ;;  %v285_v49 = vpop.permute.xlu0 %284 }
 0x1ca   :  { %v247_v27 = vmul.f32 %v617_v24, %v241_v25  ;;  %v291_v52 = vmul.f32 %v621_v48, %v285_v49 }
 0x1cc   :  { %v248_v31 = vadd.f32 %v247_v27, %v237_v26 }
 0x1ce   :  { %v263_v41 = vpop.permute.xlu1 %262  ;;  %v259_v42 = vadd.f32 %v258_v40, %v248_v31  ;;  %v318_v57 = vpop.permute.xlu0 %317  ;;  %v633_v31 = vld [vmem:[#allocation2 + $0x46] ss:$0 sm:$0xff] }
 0x1cf   :  { %v269_v43 = vmul.f32 %v619_v32, %v263_v41  ;;  %v324_v61 = vmul.f32 %v624_v56, %v318_v57 }
 0x1d1   :  { %v270_v46 = vadd.f32 %v269_v43, %v259_v42  ;;  %v634_v42 = vld [vmem:[#allocation2 + $0x47] ss:$0 sm:$0xff] }
 0x1d3   :  { %v274_v45 = vpop.permute.xlu1 %273 }
 0x1d4   :  { %v280_v47 = vmul.f32 %v620_v44, %v274_v45  ;;  %v635_v45 = vld [vmem:[#allocation2 + $0x48] ss:$0 sm:$0xff] }
 0x1d6   :  { %v281_v50 = vadd.f32 %v280_v47, %v270_v46 }
 0x1d8   :  { %v296_v53 = vpop.permute.xlu1 %295  ;;  %v292_v30 = vadd.f32 %v291_v52, %v281_v50  ;;  %v636_v50 = vld [vmem:[#allocation2 + $0x49] ss:$0 sm:$0xff] }
 0x1d9   :  { %v302_v54 = vmul.f32 %v622_v51, %v296_v53 }
 0x1db   :  { %v303_v59 = vadd.f32 %v302_v54, %v292_v30 }
 0x1dd   :  { %v307_v58 = vpop.permute.xlu1 %306 }
 0x1de   :  { %v313_v60 = vmul.f32 %v623_v55, %v307_v58 }
 0x1e0   :  { %v314_v62 = vadd.f32 %v313_v60, %v303_v59  ;;  %v640_v59 = vld [vmem:[#allocation2 + $0x5a] ss:$0 sm:$0xff] }
 0x1e2   :  { %v325_v2 = vadd.f32 %v324_v61, %v314_v62  ;;  %v329_v3 = vpop.permute.xlu1 %328  ;;  %v641_v61 = vld [vmem:[#allocation2 + $0x5b] ss:$0 sm:$0xff] }
 0x1e3   :  { %v335_v5 = vmul.f32 %v625_v63, %v329_v3 }
 0x1e5   :  { %v336_v6 = vadd.f32 %v335_v5, %v325_v2 }
 0x1e7   :  { %v337_v7 = vmax.f32 %v336_v6, 0.0  ;;  %v643_v6 = vld [vmem:[#allocation2 + $0x5d] ss:$0 sm:$0xff] }
 0x1e9   :  { %357 = vperm.xlu0 %685, %v337_v7   ;;  %342 = vperm.xlu1 %684, %v337_v7  }
 0x1ed   :  { %688 = vset.pattern.permute.xlu0 %v764_v35  ;;  %686 = vset.pattern.permute.xlu1 %v760_v1 }
 0x1ee   :  { %390 = vperm.xlu0 %688, %v337_v7   ;;  %368 = vperm.xlu1 %686, %v337_v7  }
 0x1f2   :  { %691 = vset.pattern.permute.xlu0 %v767_v38  ;;  %687 = vset.pattern.permute.xlu1 %v762_v33 }
 0x1f3   :  { %423 = vperm.xlu0 %691, %v337_v7   ;;  %379 = vperm.xlu1 %687, %v337_v7  }
 0x1f7   :  { %689 = vset.pattern.permute.xlu1 %v766_v37  ;;  %694 = vset.pattern.permute.xlu0 %v759_v0  ;;  %v629_v0 = vld [vmem:[#allocation2 + $0x42] ss:$0 sm:$0xff] }
 0x1f8   :  { %401 = vperm.xlu1 %689, %v337_v7  }
 0x1fc   :  { %690 = vset.pattern.permute.xlu1 %v763_v34 }
 0x1fd   :  { %412 = vperm.xlu1 %690, %v337_v7  }
 0x201   :  { %692 = vset.pattern.permute.xlu1 %v768_v39 }
 0x202   :  { %434 = vperm.xlu1 %692, %v337_v7  }
 0x206   :  { %693 = vset.pattern.permute.xlu1 %v765_v36 }
 0x207   :  { %445 = vperm.xlu1 %693, %v337_v7  }
 0x20b   :  { %695 = vset.pattern.permute.xlu1 %v761_v4  ;;  %v632_v4 = vld [vmem:[#allocation2 + $0x45] ss:$0 sm:$0xff] }
 0x268   :  { %v343_v10 = vpop.permute.xlu1 %342  ;;  %v358_v13 = vpop.permute.xlu0 %357 }
 0x269   :  { %v349_v11 = vmul.f32 %v626_v8, %v343_v10  ;;  %v364_v15 = vmul.f32 %v628_v12, %v358_v13  ;;  %v644_v10 = vld [vmem:[#allocation2 + $0x5e] ss:$0 sm:$0xff]  ;;  %v645_v13 = vld [vmem:[#allocation2 + $0x5f] ss:$0 sm:$0xff] }
 0x26b   :  { %v354_v14 = vadd.f32 %v627_v9, %v349_v11 }
 0x26d   :  { %v369_v16 = vpop.permute.xlu1 %368  ;;  %v365_v17 = vadd.f32 %v364_v15, %v354_v14  ;;  %v391_v24 = vpop.permute.xlu0 %390 }
 0x26e   :  { %v375_v18 = vmul.f32 %v629_v0, %v369_v16  ;;  %v397_v26 = vmul.f32 %v631_v23, %v391_v24 }
 0x270   :  { %v376_v21 = vadd.f32 %v375_v18, %v365_v17  ;;  %v646_v17 = vld [vmem:[#allocation2 + $0x60] ss:$0 sm:$0xff]  ;;  %v647_v18 = vld [vmem:[#allocation2 + $0x61] ss:$0 sm:$0xff] }
 0x272   :  { %v380_v20 = vpop.permute.xlu1 %379  ;;  %v424_v43 = vpop.permute.xlu0 %423 }
 0x273   :  { %v386_v22 = vmul.f32 %v630_v19, %v380_v20  ;;  %v430_v46 = vmul.f32 %v634_v42, %v424_v43 }
 0x275   :  { %v387_v25 = vadd.f32 %v386_v22, %v376_v21 }
 0x277   :  { %v402_v27 = vpop.permute.xlu1 %401  ;;  %v398_v28 = vadd.f32 %v397_v26, %v387_v25 }
 0x278   :  { %v408_v29 = vmul.f32 %v632_v4, %v402_v27 }
 0x27a   :  { %v409_v40 = vadd.f32 %v408_v29, %v398_v28 }
 0x27c   :  { %v413_v32 = vpop.permute.xlu1 %412 }
 0x27d   :  { %v419_v41 = vmul.f32 %v633_v31, %v413_v32 }
 0x27f   :  { %v420_v44 = vadd.f32 %v419_v41, %v409_v40 }
 0x281   :  { %v435_v47 = vpop.permute.xlu1 %434  ;;  %v431_v48 = vadd.f32 %v430_v46, %v420_v44 }
 0x282   :  { %v441_v49 = vmul.f32 %v635_v45, %v435_v47 }
 0x284   :  { %v442_v52 = vadd.f32 %v441_v49, %v431_v48 }
 0x286   :  { %v446_v51 = vpop.permute.xlu1 %445 }
 0x287   :  { %v452_v53 = vmul.f32 %v636_v50, %v446_v51 }
 0x289   :  { %v453_v30 = vadd.f32 %v452_v53, %v442_v52 }
 0x28b   :  { %v454_v54 = vmax.f32 %v453_v30, 0.0 }
 0x28d   :  { %474 = vperm.xlu1 %695, %v454_v54   ;;  %459 = vperm.xlu0 %694, %v454_v54  }
 0x291   :  { %696 = vset.pattern.permute.xlu1 %v760_v1  ;;  %697 = vset.pattern.permute.xlu0 %v762_v33  ;;  %v637_v1 = vld [vmem:[#allocation2 + $0x58] ss:$0 sm:$0xff]  ;;  %v639_v33 = vld [vmem:[#allocation2 + $0x59] ss:$0 sm:$0xff] }
 0x292   :  { %485 = vperm.xlu1 %696, %v454_v54   ;;  %496 = vperm.xlu0 %697, %v454_v54  }
 0x296   :  { %698 = vset.pattern.permute.xlu1 %v764_v35  ;;  %700 = vset.pattern.permute.xlu0 %v763_v34  ;;  %v638_v35 = vld [vmem:[#allocation2 + $0x68] ss:$0 sm:$0xff] }
 0x297   :  { %507 = vperm.xlu1 %698, %v454_v54   ;;  %529 = vperm.xlu0 %700, %v454_v54  }
 0x29b   :  { %699 = vset.pattern.permute.xlu1 %v766_v37  ;;  %703 = vset.pattern.permute.xlu0 %v765_v36 }
 0x29c   :  { %518 = vperm.xlu1 %699, %v454_v54   ;;  %562 = vperm.xlu0 %703, %v454_v54  }
 0x2a0   :  { %701 = vset.pattern.permute.xlu1 %v767_v38  ;;  %v642_v38 = vld [vmem:[#allocation2 + $0x5c] ss:$0 sm:$0xff] }
 0x2a1   :  { %540 = vperm.xlu1 %701, %v454_v54  }
 0x2a5   :  { %702 = vset.pattern.permute.xlu1 %v768_v39 }
 0x2a6   :  { %551 = vperm.xlu1 %702, %v454_v54  }
 0x30c   :  { %v475_v55 = vpop.permute.xlu1 %474  ;;  %v460_v56 = vpop.permute.xlu0 %459 }
 0x30d   :  { %v466_v34 = vmul.f32 %v637_v1, %v460_v56  ;;  %v481_v57 = vmul.f32 %v639_v33, %v475_v55 }
 0x30f   :  { %v471_v58 = vadd.f32 %v638_v35, %v466_v34 }
 0x311   :  { %v486_v37 = vpop.permute.xlu1 %485  ;;  %v482_v60 = vadd.f32 %v481_v57, %v471_v58  ;;  %v497_v62 = vpop.permute.xlu0 %496 }
 0x312   :  { %v492_v36 = vmul.f32 %v640_v59, %v486_v37  ;;  %v503_v2 = vmul.f32 %v641_v61, %v497_v62 }
 0x314   :  { %v493_v63 = vadd.f32 %v492_v36, %v482_v60 }
 0x316   :  { %v508_v3 = vpop.permute.xlu1 %507  ;;  %v504_v39 = vadd.f32 %v503_v2, %v493_v63  ;;  %v530_v11 = vpop.permute.xlu0 %529 }
 0x317   :  { %v514_v5 = vmul.f32 %v642_v38, %v508_v3  ;;  %v536_v14 = vmul.f32 %v644_v10, %v530_v11 }
 0x319   :  { %v515_v8 = vadd.f32 %v514_v5, %v504_v39 }
 0x31b   :  { %v519_v7 = vpop.permute.xlu1 %518  ;;  %v563_v19 = vpop.permute.xlu0 %562 }
 0x31c   :  { %v525_v9 = vmul.f32 %v643_v6, %v519_v7  ;;  %v569_v23 = vmul.f32 %v647_v18, %v563_v19 }
 0x31e   :  { %v526_v12 = vadd.f32 %v525_v9, %v515_v8 }
 0x320   :  { %v541_v0 = vpop.permute.xlu1 %540  ;;  %v537_v15 = vadd.f32 %v536_v14, %v526_v12 }
 0x321   :  { %v547_v16 = vmul.f32 %v645_v13, %v541_v0 }
 0x323   :  { %v548_v21 = vadd.f32 %v547_v16, %v537_v15 }
 0x325   :  { %v552_v20 = vpop.permute.xlu1 %551 }
 0x326   :  { %v558_v22 = vmul.f32 %v646_v17, %v552_v20 }
 0x328   :  { %v559_v24 = vadd.f32 %v558_v22, %v548_v21 }
 0x32a   :  { %v570_v25 = vadd.f32 %v569_v23, %v559_v24 }
 0x32c   :  { %571 = vmax.xlane.f32.xlu1 %v570_v25 }
 0x3b9   :  { %v572_v4 = vpop.xlane.xlu1 %571 }
 0x3ba   :  { %v573_v26 = vsub.f32 %v570_v25, %v572_v4 }
 0x3bc   :  { %v574_v27 = vmul.f32 1.442695, %v573_v26 }
 0x3be   :  { %704 = vpow2.f32 %v574_v27 }
 0x3c8   :  { %v705_v28 = vpop.eup %704 }
 0x3c9   :  { %576 = vadd.xlane.f32.xlu0 %v705_v28 }
 0x456   :  { %v577_v29 = vpop.xlane.xlu0 %576 }
 0x457   :  { %706 = vrcp.f32 %v577_v29 }
 0x461   :  { %v707_v31 = vpop.eup %706 }
 0x462   :  { %v579_v32 = vmul.f32 %v707_v31, %v705_v28 }
 0x464   :  { %580 = vst [vmem:[#allocation5] sm:$0xff] %v579_v32 }
 0x465   :  { %741 = shalt.err (!%p738_p12)
}
 0x466   :  { %s742_s5 = scalar_lea.hbm %s868_s3, 128 }
 0x467   :  { %p743_p13 = scmp.ne.s32.totalorder %s868_s3, %s742_s5  ;;  %p746_p0 = scmp.lt.u32.totalorder %s742_s5, %s868_s3 }
 0x469   :  { %p748_p1 = pnand %p746_p0, %p743_p13 }
 0x46b   :  { %751 = shalt.err (!%p748_p1)
}
 0x46c   :  { %590 = dma.vmem_to_hbm [thread:$0]  %s588_s1, 128, %s868_s3, [#allocation4]  }
 0x46d   :  { %754 = dma.done.wait [#allocation4], 128  }
 0x46e   :  { %755 = vsyncadd [#allocation4], 4294967168 }
 0x46f   :  { %594 = vsyncpa [#allocation3], 1 }
 0x470   :  { %595 = vsyncpa [#allocation4], 1 }

</bundles_post_ra>
